<compile_context>
chip_gen: v7x
topology: tpu7x:2x2x1
jax: 0.10.0
libtpu: 0.0.40
codegen_flags: <defaults>
</compile_context>

<pallas_src>
import functools

import jax
import jax.numpy as jnp
from jax.experimental import pallas as pl
from jax.experimental.pallas import tpu as pltpu


def mlp_kernel(x_ref, w1_ref, b1_ref, w2_ref, b2_ref, w3_ref, bout_ref, out_ref):
    """Fused PPO-MLP forward for one (TB, n_in) batch tile.

    out lanes [:H]  = x_features = tanh(tanh(x@fw1+fb1)@fw2+fb2)
    out lanes [H:]  = value      = tanh(tanh(x@cw1+cb1)@cw2+cb2)@cw3 + cb3
                       (broadcast across the last H lanes)
    """
    x = x_ref[...]

    # layer 1 (both branches in one lane-dense 128-wide matmul)
    h1 = jnp.tanh(
        jnp.dot(x, w1_ref[...], preferred_element_type=jnp.float32) + b1_ref[...])

    # layer 2 (block-diagonal fused matmul)
    h2 = jnp.tanh(
        jnp.dot(h1, w2_ref[...], preferred_element_type=jnp.float32) + b2_ref[...])

    # critic head: w3 row is zero in lanes [:H] and cw3^T in lanes [H:],
    # so a VPU multiply + XLU lane-reduction replaces the N=1 MXU matmul.
    v = jnp.sum(h2 * w3_ref[...], axis=-1, keepdims=True)

    # assemble the lane-dense output slab: feat in lanes [:H], value in [H:];
    # bout adds cb3 only on the value lanes.
    h2w = h2.shape[-1]
    lane = jax.lax.broadcasted_iota(jnp.int32, h2.shape, 1)
    out = jnp.where(lane >= (h2w // 2), v, h2) + bout_ref[...]
    out_ref[...] = out.astype(out_ref.dtype)


def pack_params(p):
    """Pack the 5 Linear layers into lane-dense fused operands (done once)."""
    H = p["fw2"].shape[1]
    dt = p["fw1"].dtype
    z = jnp.zeros((H, H), dt)
    w1 = jnp.concatenate([p["fw1"], p["cw1"]], axis=1)                   # (n_in, 2H)
    b1 = jnp.concatenate([p["fb1"], p["cb1"]], axis=1)                   # (1, 2H)
    w2 = jnp.block([[p["fw2"], z], [z, p["cw2"]]])                       # (2H, 2H)
    b2 = jnp.concatenate([p["fb2"], p["cb2"]], axis=1)                   # (1, 2H)
    w3 = jnp.concatenate([jnp.zeros((1, H), dt), p["cw3"].T], axis=1)    # (1, 2H)
    bout = jnp.concatenate(
        [jnp.zeros((1, H), dt),
         jnp.broadcast_to(p["cb3"].reshape(1, 1), (1, H))], axis=1)      # (1, 2H)
    return dict(w1=w1, b1=b1, w2=w2, b2=b2, w3=w3, bout=bout)


def mlp_forward(x, packed, tb=None):
    """Returns (value, x_features), matching MLP.forward semantics."""
    B, n_in = x.shape
    H2 = packed["w1"].shape[1]          # 2 * hidden_size
    H = H2 // 2
    dt = x.dtype

    if tb is None:
        # batch tile: big enough to amortize per-step overhead, tiny vs. VMEM
        # (tb=1024 slab is ~0.5 MiB) so it is safe on v7x's 64 MiB as well.
        tb = max(8, min(B, 1024))
    pad = (-B) % tb
    xp = jnp.pad(x, ((0, pad), (0, 0))) if pad else x
    Bp = xp.shape[0]
    grid = (Bp // tb,)

    def full(shape):
        # whole-array block, VMEM-resident across all grid steps
        return pl.BlockSpec(shape, lambda i: (0, 0))

    out = pl.pallas_call(
        mlp_kernel,
        out_shape=jax.ShapeDtypeStruct((Bp, H2), dt),
        grid=grid,
        in_specs=[
            pl.BlockSpec((tb, n_in), lambda i: (i, 0)),   # x: tiled over batch
            full((n_in, H2)),                             # packed layer-1 weight
            full((1, H2)),                                # packed layer-1 bias
            full((H2, H2)),                               # block-diag layer-2 weight
            full((1, H2)),                                # packed layer-2 bias
            full((1, H2)),                                # critic-head row (zero-padded)
            full((1, H2)),                                # output bias (cb3 on value lanes)
        ],
        out_specs=pl.BlockSpec((tb, H2), lambda i: (i, 0)),
        compiler_params=pltpu.CompilerParams(
            dimension_semantics=("parallel",)),           # shard batch over TCs (v7x)
    )(xp, packed["w1"], packed["b1"], packed["w2"], packed["b2"],
      packed["w3"], packed["bout"])

    out = out[:B]
    x_features = out[:, :H]
    value = out[:, H:H + 1]
    return value, x_features


def init_params(key, num_inputs, hidden_size=64, dtype=jnp.float32):
    """Deterministic synthetic init (shapes match init_layer(nn.Linear(...)))."""
    ks = jax.random.split(key, 5)

    def lin(k, fan_in, fan_out):
        # scaled-gaussian stand-in for orthogonal init with gain sqrt(2)
        scale = jnp.sqrt(2.0 / fan_in)
        w = (jax.random.normal(k, (fan_in, fan_out), dtype=jnp.float32)
             * scale).astype(dtype)
        b = jnp.zeros((1, fan_out), dtype=dtype)
        return w, b

    fw1, fb1 = lin(ks[0], num_inputs, hidden_size)
    fw2, fb2 = lin(ks[1], hidden_size, hidden_size)
    cw1, cb1 = lin(ks[2], num_inputs, hidden_size)
    cw2, cb2 = lin(ks[3], hidden_size, hidden_size)
    cw3, cb3 = lin(ks[4], hidden_size, 1)
    return dict(fw1=fw1, fb1=fb1, fw2=fw2, fb2=fb2,
                cw1=cw1, cb1=cb1, cw2=cw2, cb2=cb2,
                cw3=cw3, cb3=cb3)


def reference_forward(x, p):
    """Pure-JAX reference mirroring the PyTorch module."""
    h = jnp.tanh(x @ p["fw1"] + p["fb1"])
    feat = jnp.tanh(h @ p["fw2"] + p["fb2"])
    c = jnp.tanh(x @ p["cw1"] + p["cb1"])
    c = jnp.tanh(c @ p["cw2"] + p["cb2"])
    value = c @ p["cw3"] + p["cb3"]
    return value, feat


if __name__ == "__main__":
    B, NUM_INPUTS, HIDDEN = 200, 32, 64   # B=200 with TB=128 exercises grid + padding

    key = jax.random.PRNGKey(0)
    k_x, k_p = jax.random.split(key)
    x = jax.random.normal(k_x, (B, NUM_INPUTS), dtype=jnp.float32)
    params = init_params(k_p, NUM_INPUTS, HIDDEN)
    packed = pack_params(params)

    fwd = jax.jit(functools.partial(mlp_forward, tb=128))
    value, feats = fwd(x, packed)
    jax.block_until_ready((value, feats))

    ref_value, ref_feats = reference_forward(x, params)
    assert value.shape == (B, 1) and feats.shape == (B, HIDDEN)
    assert jnp.allclose(value, ref_value, atol=2e-5, rtol=2e-5)
    assert jnp.allclose(feats, ref_feats, atol=2e-5, rtol=2e-5)

    print("KERNEL_OK")
</pallas_src>

<mosaic_0001>
module attributes {stable_mosaic.version = 11 : i64} {
  func.func @mlp_kernel(%arg0: i32, %arg1: memref<128x32xf32, #tpu.memory_space<vmem>>, %arg2: memref<32x128xf32, #tpu.memory_space<vmem>>, %arg3: memref<1x128xf32, #tpu.memory_space<vmem>>, %arg4: memref<128x128xf32, #tpu.memory_space<vmem>>, %arg5: memref<1x128xf32, #tpu.memory_space<vmem>>, %arg6: memref<1x128xf32, #tpu.memory_space<vmem>>, %arg7: memref<1x128xf32, #tpu.memory_space<vmem>>, %arg8: memref<128x128xf32, #tpu.memory_space<vmem>>) attributes {dimension_semantics = [#tpu.dimension_semantics<parallel>], iteration_bounds = array<i64: 2>, scalar_prefetch = 0 : i64, scratch_operands = 0 : i64, tpu.core_type = #tpu.core_type<tc>, window_params = [{transform_indices = @transform_0, window_bounds = array<i64: 128, 32>}, {pipeline_mode = #tpu.pipeline_mode<synchronous>, transform_indices = @transform_1, window_bounds = array<i64: 32, 128>}, {pipeline_mode = #tpu.pipeline_mode<synchronous>, transform_indices = @transform_2, window_bounds = array<i64: 1, 128>}, {pipeline_mode = #tpu.pipeline_mode<synchronous>, transform_indices = @transform_3, window_bounds = array<i64: 128, 128>}, {pipeline_mode = #tpu.pipeline_mode<synchronous>, transform_indices = @transform_4, window_bounds = array<i64: 1, 128>}, {pipeline_mode = #tpu.pipeline_mode<synchronous>, transform_indices = @transform_5, window_bounds = array<i64: 1, 128>}, {pipeline_mode = #tpu.pipeline_mode<synchronous>, transform_indices = @transform_6, window_bounds = array<i64: 1, 128>}, {transform_indices = @transform_7, window_bounds = array<i64: 128, 128>}]} {
    %c0 = arith.constant 0 : index
    %c0_0 = arith.constant 0 : index
    %0 = vector.load %arg1[%c0, %c0_0] : memref<128x32xf32, #tpu.memory_space<vmem>>, vector<128x32xf32>
    %c0_1 = arith.constant 0 : index
    %c0_2 = arith.constant 0 : index
    %1 = vector.load %arg2[%c0_1, %c0_2] : memref<32x128xf32, #tpu.memory_space<vmem>>, vector<32x128xf32>
    %cst = arith.constant dense<0.000000e+00> : vector<128x128xf32>
    %2 = tpu.matmul %0, %1, %cst {dimension_numbers = #tpu.dot_dimension_numbers<[1], [0], [0], [1], [0, 0, 1, 1], [], []>} : vector<128x32xf32>, vector<32x128xf32>, vector<128x128xf32> -> vector<128x128xf32>
    %c0_3 = arith.constant 0 : index
    %c0_4 = arith.constant 0 : index
    %3 = vector.load %arg3[%c0_3, %c0_4] : memref<1x128xf32, #tpu.memory_space<vmem>>, vector<1x128xf32>
    %4 = vector.broadcast %3 : vector<1x128xf32> to vector<128x128xf32>
    %5 = arith.addf %2, %4 : vector<128x128xf32>
    %6 = math.tanh %5 : vector<128x128xf32>
    %c0_5 = arith.constant 0 : index
    %c0_6 = arith.constant 0 : index
    %7 = vector.load %arg4[%c0_5, %c0_6] : memref<128x128xf32, #tpu.memory_space<vmem>>, vector<128x128xf32>
    %cst_7 = arith.constant dense<0.000000e+00> : vector<128x128xf32>
    %8 = tpu.matmul %6, %7, %cst_7 {dimension_numbers = #tpu.dot_dimension_numbers<[1], [0], [0], [1], [0, 0, 1, 1], [], []>} : vector<128x128xf32>, vector<128x128xf32>, vector<128x128xf32> -> vector<128x128xf32>
    %c0_8 = arith.constant 0 : index
    %c0_9 = arith.constant 0 : index
    %9 = vector.load %arg5[%c0_8, %c0_9] : memref<1x128xf32, #tpu.memory_space<vmem>>, vector<1x128xf32>
    %10 = vector.broadcast %9 : vector<1x128xf32> to vector<128x128xf32>
    %11 = arith.addf %8, %10 : vector<128x128xf32>
    %12 = math.tanh %11 : vector<128x128xf32>
    %c0_10 = arith.constant 0 : index
    %c0_11 = arith.constant 0 : index
    %13 = vector.load %arg6[%c0_10, %c0_11] : memref<1x128xf32, #tpu.memory_space<vmem>>, vector<1x128xf32>
    %14 = vector.broadcast %13 : vector<1x128xf32> to vector<128x128xf32>
    %15 = arith.mulf %12, %14 : vector<128x128xf32>
    %cst_12 = arith.constant dense<0.000000e+00> : vector<128xf32>
    %16 = vector.multi_reduction <add>, %15, %cst_12 [1] : vector<128x128xf32> to vector<128xf32>
    %17 = vector.shape_cast %16 : vector<128xf32> to vector<128x1xf32>
    %18 = tpu.iota {dimensions = array<i32: 1>} : vector<128x128xi32>
    %c64_i32 = arith.constant 64 : i32
    %19 = vector.broadcast %c64_i32 : i32 to vector<128x128xi32>
    %20 = arith.cmpi sge, %18, %19 : vector<128x128xi32>
    %21 = vector.shape_cast %17 : vector<128x1xf32> to vector<128x1xf32>
    %22 = vector.broadcast %21 : vector<128x1xf32> to vector<128x128xf32>
    %23 = arith.select %20, %22, %12 : vector<128x128xi1>, vector<128x128xf32>
    %c0_13 = arith.constant 0 : index
    %c0_14 = arith.constant 0 : index
    %24 = vector.load %arg7[%c0_13, %c0_14] : memref<1x128xf32, #tpu.memory_space<vmem>>, vector<1x128xf32>
    %25 = vector.broadcast %24 : vector<1x128xf32> to vector<128x128xf32>
    %26 = arith.addf %23, %25 : vector<128x128xf32>
    %c0_15 = arith.constant 0 : index
    %c0_16 = arith.constant 0 : index
    %27 = vector.load %arg8[%c0_15, %c0_16] : memref<128x128xf32, #tpu.memory_space<vmem>>, vector<128x128xf32>
    tpu.vector_store %arg8[%c0_15, %c0_16], %26 {strides = array<i32>} : memref<128x128xf32, #tpu.memory_space<vmem>>, vector<128x128xf32>,
    return
  }
  func.func @transform_0(%arg0: i32) -> (i32, i32) {
    %c0_i32 = arith.constant 0 : i32
    %c0_i32_0 = arith.constant 0 : i32
    return %arg0, %c0_i32 : i32, i32
  }
  func.func @transform_1(%arg0: i32) -> (i32, i32) {
    %c0_i32 = arith.constant 0 : i32
    %c0_i32_0 = arith.constant 0 : i32
    %c0_i32_1 = arith.constant 0 : i32
    return %c0_i32, %c0_i32_0 : i32, i32
  }
  func.func @transform_2(%arg0: i32) -> (i32, i32) {
    %c0_i32 = arith.constant 0 : i32
    %c0_i32_0 = arith.constant 0 : i32
    %c0_i32_1 = arith.constant 0 : i32
    return %c0_i32, %c0_i32_0 : i32, i32
  }
  func.func @transform_3(%arg0: i32) -> (i32, i32) {
    %c0_i32 = arith.constant 0 : i32
    %c0_i32_0 = arith.constant 0 : i32
    %c0_i32_1 = arith.constant 0 : i32
    return %c0_i32, %c0_i32_0 : i32, i32
  }
  func.func @transform_4(%arg0: i32) -> (i32, i32) {
    %c0_i32 = arith.constant 0 : i32
    %c0_i32_0 = arith.constant 0 : i32
    %c0_i32_1 = arith.constant 0 : i32
    return %c0_i32, %c0_i32_0 : i32, i32
  }
  func.func @transform_5(%arg0: i32) -> (i32, i32) {
    %c0_i32 = arith.constant 0 : i32
    %c0_i32_0 = arith.constant 0 : i32
    %c0_i32_1 = arith.constant 0 : i32
    return %c0_i32, %c0_i32_0 : i32, i32
  }
  func.func @transform_6(%arg0: i32) -> (i32, i32) {
    %c0_i32 = arith.constant 0 : i32
    %c0_i32_0 = arith.constant 0 : i32
    %c0_i32_1 = arith.constant 0 : i32
    return %c0_i32, %c0_i32_0 : i32, i32
  }
  func.func @transform_7(%arg0: i32) -> (i32, i32) {
    %c0_i32 = arith.constant 0 : i32
    %c0_i32_0 = arith.constant 0 : i32
    return %arg0, %c0_i32 : i32, i32
  }
}

</mosaic_0001>

<bundles_post_ra>
// kernel: mlp_forward.1
= control target key start
LH: loop header
LB: loop body
LE: loop exit
PB: predicated region body
PF: predicated region fallthrough
CT: control target
= control target key end

     0   :  { %s1219_s24 = smov 0   ;;  %s1538_s0 = inlined_call_operand.vmem [shape: f32[256,32], index: 0, kind: input, shape index: {}]   ;;  %s1539_s1 = inlined_call_operand.vmem [shape: f32[32,128], index: 1, kind: input, shape index: {}]   ;;  %s1540_s2 = inlined_call_operand.vmem [shape: f32[1,128], index: 2, kind: input, shape index: {}]   ;;  %s1541_s3 = inlined_call_operand.vmem [shape: f32[128,128], index: 3, kind: input, shape index: {}]   ;;  %s1542_s4 = inlined_call_operand.vmem [shape: f32[1,128], index: 4, kind: input, shape index: {}]   ;;  %s1543_s5 = inlined_call_operand.vmem [shape: f32[1,128], index: 5, kind: input, shape index: {}]   ;;  %s1544_s6 = inlined_call_operand.vmem [shape: f32[1,128], index: 6, kind: input, shape index: {}]   ;;  %s1545_s7 = inlined_call_operand.vmem [shape: f32[256,128], index: 7, kind: output, shape index: {}]  }
   0x1 LB: > { %s872_s25 = sadd.s32 4294967295, %s1177_s24   ;;  %p876_p0 = scmp.ge.s32.totalorder %s1177_s24, 1  ;;  %s1177_s24 = sphi %s1219_s24, %s17_s24  }
   0x2   : > { %p238_p1 = scmp.lt.s32.totalorder %s1177_s24, 3 }
   0x4   : > { %p239_p2 = pnand %p876_p0, %p238_p1 }
   0x5   : > { %v298_v0 = vld [vmem:[%s1539_s1] sm:$0xff] (!%p239_p2)  ;;  %v299_v1 = vld [vmem:[%s1539_s1 + $0x8] sm:$0xff] (!%p239_p2)  ;;  %v300_v2 = vld [vmem:[%s1539_s1 + $0x10] sm:$0xff] (!%p239_p2)  ;;  %s877_s9 = sshll.u32 (!%p239_p2), %s872_s25, 4  ;;  %vm309_vm0 = vcmask (!%p239_p2), 261120  }
   0x6   : > { %242 = sbr.rel (%p239_p2) target bundleno = 650 (0x28a), region = 48  ;;  %v1043_v3 = vpack.c.bf16 (!%p239_p2), %v299_v1, %v298_v0  ;;  %v301_v4 = vld [vmem:[%s1539_s1 + $0x18] sm:$0xff] (!%p239_p2)  ;;  %p271_p3 = scmp.lt.s32.totalorder (!%p239_p2), %s877_s9, 31  ;;  %v519_v5 = vld [vmem:[%s1541_s3] sm:$0xff] (!%p239_p2)  ;;  %v520_v6 = vld [vmem:[%s1541_s3 + $0x8] sm:$0xff] (!%p239_p2) }
   0x7   : > { %v1047_v7 = vpack.c.bf16 (!%p239_p2), %v301_v4, %v300_v2  ;;  %v1051_v8 = vpack.c.bf16 (!%p239_p2), %v520_v6, %v519_v5  ;;  %v521_v9 = vld [vmem:[%s1541_s3 + $0x10] sm:$0xff] (!%p239_p2)  ;;  %v522_v10 = vld [vmem:[%s1541_s3 + $0x18] sm:$0xff] (!%p239_p2)  ;;  %v523_v12 = vld [vmem:[%s1541_s3 + $0x20] sm:$0xff] (!%p239_p2) }
   0x8   : > { %1044 = vmatprep.subr.bf16.mxu0 (!%p239_p2), %v1043_v3  ;;  %v1055_v11 = vpack.c.bf16 (!%p239_p2), %v522_v10, %v521_v9  ;;  %v524_v13 = vld [vmem:[%s1541_s3 + $0x28] sm:$0xff] (!%p239_p2)  ;;  %v525_v18 = vld [vmem:[%s1541_s3 + $0x30] sm:$0xff] (!%p239_p2)  ;;  %v526_v19 = vld [vmem:[%s1541_s3 + $0x38] sm:$0xff] (!%p239_p2) }
   0x9   : > { %1046 = vmatpush3.bf16.msra.mxu0 (!%p239_p2), %v1043_v3  ;;  %1083 = vmatprep.subr.bf16.mxu1 (!%p239_p2), %v1051_v8  ;;  %v1059_v16 = vpack.c.bf16 (!%p239_p2), %v524_v13, %v523_v12  ;;  %v1063_v21 = vpack.c.bf16 (!%p239_p2), %v526_v19, %v525_v18  ;;  %v527_v23 = vld [vmem:[%s1541_s3 + $0x40] sm:$0xff] (!%p239_p2)  ;;  %v528_v24 = vld [vmem:[%s1541_s3 + $0x48] sm:$0xff] (!%p239_p2)  ;;  %v529_v37 = vld [vmem:[%s1541_s3 + $0x50] sm:$0xff] (!%p239_p2) }
   0xa   : > { %1048 = vmatprep.subr.bf16.mxu0 (!%p239_p2), %v1047_v7  ;;  %1091 = vmatpush3.bf16.msra.mxu1 (!%p239_p2), %v1051_v8  ;;  %v1067_v26 = vpack.c.bf16 (!%p239_p2), %v528_v24, %v527_v23  ;;  %v530_v38 = vld [vmem:[%s1541_s3 + $0x58] sm:$0xff] (!%p239_p2)  ;;  %v531_v40 = vld [vmem:[%s1541_s3 + $0x60] sm:$0xff] (!%p239_p2)  ;;  %v532_v41 = vld [vmem:[%s1541_s3 + $0x68] sm:$0xff] (!%p239_p2) }
   0xb   : > { %1084 = vmatprep.subr.bf16.mxu1 (!%p239_p2), %v1055_v11  ;;  %v1071_v39 = vpack.c.bf16 (!%p239_p2), %v530_v38, %v529_v37  ;;  %v1075_v42 = vpack.c.bf16 (!%p239_p2), %v532_v41, %v531_v40  ;;  %v533_v43 = vld [vmem:[%s1541_s3 + $0x70] sm:$0xff] (!%p239_p2)  ;;  %v534_v44 = vld [vmem:[%s1541_s3 + $0x78] sm:$0xff] (!%p239_p2)  ;;  %v1332_v46 = vld [vmem:[%s1540_s2] ss:$0 sm:$0xff] (!%p239_p2) }
   0xc   : > { %v1079_v45 = vpack.c.bf16 (!%p239_p2), %v534_v44, %v533_v43  ;;  %v1364_v44 = vld [vmem:[%s1543_s5] ss:$0 sm:$0xff] (!%p239_p2) }
   0xd   : > { %s1547_s9 = smov (!%p271_p3, %s877_s9), 31  ;;  %1050 = vmatpush3.bf16.msra.mxu0 %v1047_v7 }
   0xe   : > { %s878_s20 = sshll.u32 %s1547_s9, 3  ;;  %1052 = vmatprep.subr.bf16.mxu0 %v1051_v8  ;;  %1092 = vmatpush3.bf16.msra.mxu1 %v1055_v11 }
   0xf   : > { %s1265_s28 = scalar_lea.vmem %s1538_s0, %s878_s20  ;;  %1085 = vmatprep.subr.bf16.mxu1 %v1059_v16  ;;  %s1453_s17 = scalar_lea.vmem %s1545_s7, %s878_s20 }
  0x10   : > { %v282_v14 = vld [vmem:[%s1265_s28] sm:$0xff]  ;;  %v283_v15 = vld [vmem:[%s1265_s28 + $0x8] sm:$0xff]  ;;  %v284_v17 = vld [vmem:[%s1265_s28 + $0x10] sm:$0xff] }
  0x11   : > { %963 = vmatprep.mubr.msk.f32.mxu0 %vm309_vm0, %v282_v14  ;;  %v285_v20 = vld [vmem:[%s1265_s28 + $0x18] sm:$0xff]  ;;  %v286_v22 = vld [vmem:[%s1265_s28 + $0x20] sm:$0xff]  ;;  %v287_v25 = vld [vmem:[%s1265_s28 + $0x28] sm:$0xff] }
  0x12   : > { %964 = vmatmul.mubr.msk.f32.vlgmr.msra.gmra.mrb[0].mxu0 %vm309_vm0, %v283_v15  ;;  %1093 = vmatpush3.bf16.msra.mxu1 %v1059_v16  ;;  %v288_v27 = vld [vmem:[%s1265_s28 + $0x30] sm:$0xff]  ;;  %v289_v28 = vld [vmem:[%s1265_s28 + $0x38] sm:$0xff]  ;;  %v290_v29 = vld [vmem:[%s1265_s28 + $0x40] sm:$0xff] }
  0x13   : > { %966 = vmatprep.mubr.msk.f32.mxu0 %vm309_vm0, %v284_v17  ;;  %1054 = vmatpush3.bf16.msra.mxu0 %v1051_v8  ;;  %v291_v30 = vld [vmem:[%s1265_s28 + $0x48] sm:$0xff]  ;;  %v292_v31 = vld [vmem:[%s1265_s28 + $0x50] sm:$0xff]  ;;  %v293_v32 = vld [vmem:[%s1265_s28 + $0x58] sm:$0xff] }
  0x14   : > { %1056 = vmatprep.subr.bf16.mxu0 %v1055_v11  ;;  %1086 = vmatprep.subr.bf16.mxu1 %v1063_v21  ;;  %v294_v33 = vld [vmem:[%s1265_s28 + $0x60] sm:$0xff]  ;;  %v295_v34 = vld [vmem:[%s1265_s28 + $0x68] sm:$0xff]  ;;  %v296_v35 = vld [vmem:[%s1265_s28 + $0x70] sm:$0xff] }
  0x15   : > { %v297_v36 = vld [vmem:[%s1265_s28 + $0x78] sm:$0xff] }
  0x16   : > { %967 = vmatmul.mubr.msk.f32.gmra.mrb[2].mxu0 %vm309_vm0, %v285_v20  ;;  %1094 = vmatpush3.bf16.msra.mxu1 %v1063_v21 }
  0x17   : > { %969 = vmatprep.mubr.msk.f32.mxu0 %vm309_vm0, %v286_v22  ;;  %1058 = vmatpush3.bf16.msra.mxu0 %v1055_v11 }
  0x18   : > { %1060 = vmatprep.subr.bf16.mxu0 %v1059_v16  ;;  %1087 = vmatprep.subr.bf16.mxu1 %v1067_v26 }
  0x1a   : > { %970 = vmatmul.mubr.msk.f32.gmra.mrb[4].mxu0 %vm309_vm0, %v287_v25  ;;  %1095 = vmatpush3.bf16.msra.mxu1 %v1067_v26 }
  0x1b   : > { %972 = vmatprep.mubr.msk.f32.mxu0 %vm309_vm0, %v288_v27  ;;  %1062 = vmatpush3.bf16.msra.mxu0 %v1059_v16 }
  0x1c   : > { %1064 = vmatprep.subr.bf16.mxu0 %v1063_v21  ;;  %1088 = vmatprep.subr.bf16.mxu1 %v1071_v39 }
  0x1e   : > { %973 = vmatmul.mubr.msk.f32.gmra.mrb[6].mxu0 %vm309_vm0, %v289_v28  ;;  %1096 = vmatpush3.bf16.msra.mxu1 %v1071_v39 }
  0x1f   : > { %975 = vmatprep.mubr.msk.f32.mxu0 %vm309_vm0, %v290_v29  ;;  %1066 = vmatpush3.bf16.msra.mxu0 %v1063_v21 }
  0x20   : > { %1068 = vmatprep.subr.bf16.mxu0 %v1067_v26  ;;  %1089 = vmatprep.subr.bf16.mxu1 %v1075_v42 }
  0x22   : > { %976 = vmatmul.mubr.msk.f32.gmra.mrb[8].mxu0 %vm309_vm0, %v291_v30  ;;  %1097 = vmatpush3.bf16.msra.mxu1 %v1075_v42 }
  0x23   : > { %978 = vmatprep.mubr.msk.f32.mxu0 %vm309_vm0, %v292_v31  ;;  %1070 = vmatpush3.bf16.msra.mxu0 %v1067_v26  ;;  %v1353_v31 = vld [vmem:[%s1542_s4] ss:$0 sm:$0xff] }
  0x24   : > { %1072 = vmatprep.subr.bf16.mxu0 %v1071_v39  ;;  %1090 = vmatprep.subr.bf16.mxu1 %v1079_v45 }
  0x26   : > { %979 = vmatmul.mubr.msk.f32.gmra.mrb[10].mxu0 %vm309_vm0, %v293_v32  ;;  %1098 = vmatpush3.bf16.msra.mxu1 %v1079_v45 }
  0x27   : > { %981 = vmatprep.mubr.msk.f32.mxu0 %vm309_vm0, %v294_v33  ;;  %1074 = vmatpush3.bf16.msra.mxu0 %v1071_v39 }
  0x28   : > { %1076 = vmatprep.subr.bf16.mxu0 %v1075_v42 }
  0x2a   : > { %982 = vmatmul.mubr.msk.f32.gmra.mrb[12].mxu0 %vm309_vm0, %v295_v34 }
  0x2b   : > { %984 = vmatprep.mubr.msk.f32.mxu0 %vm309_vm0, %v296_v35  ;;  %1078 = vmatpush3.bf16.msra.mxu0 %v1075_v42 }
  0x2c   : > { %1080 = vmatprep.subr.bf16.mxu0 %v1079_v45 }
  0x2e   : > { %985 = vmatmul.mubr.msk.f32.gmra.mrb[14].mxu0 %vm309_vm0, %v297_v36 }
  0x2f   : > { %1082 = vmatpush3.bf16.msra.mxu0 %v1079_v45 }
  0xe5   : > { %v965_v47 = vpop.f32.mrb[0].mxu0 }
  0xe6   : > { %v430_v48 = vadd.f32 %v965_v47, %v1332_v46  ;;  %v424_v49 = vpop.f32.mrb[1].mxu0 }
  0xe7   : > { %v425_v50 = vadd.f32 %v1332_v46, %v424_v49 }
  0xe9   : > { %1107 = vtanh.f32 %v425_v50  ;;  %v968_v51 = vpop.f32.mrb[2].mxu0 }
  0xea   : > { %1109 = vtanh.f32 %v430_v48  ;;  %v440_v52 = vadd.f32 %v968_v51, %v1332_v46  ;;  %v434_v53 = vpop.f32.mrb[3].mxu0 }
  0xeb   : > { %v435_v54 = vadd.f32 %v1332_v46, %v434_v53 }
  0xed   : > { %1111 = vtanh.f32 %v435_v54  ;;  %v971_v55 = vpop.f32.mrb[4].mxu0 }
  0xee   : > { %1113 = vtanh.f32 %v440_v52  ;;  %v450_v56 = vadd.f32 %v971_v55, %v1332_v46  ;;  %v444_v57 = vpop.f32.mrb[5].mxu0 }
  0xef   : > { %v445_v58 = vadd.f32 %v1332_v46, %v444_v57 }
  0xf0   : > { %1115 = vtanh.f32 %v450_v56 }
  0xf1   : > { %1117 = vtanh.f32 %v445_v58  ;;  %v974_v59 = vpop.f32.mrb[6].mxu0 }
  0xf2   : > { %v460_v60 = vadd.f32 %v974_v59, %v1332_v46  ;;  %v454_v61 = vpop.f32.mrb[7].mxu0 }
  0xf3   : > { %v1108_v62 = vpop.eup %1107  ;;  %v455_v63 = vadd.f32 %v1332_v46, %v454_v61 }
  0xf4   : > { %v1110_v0 = vpop.eup %1109  ;;  %1119 = vtanh.f32 %v460_v60  ;;  %1019 = vmatprep.mubr.f32.mxu0 %v1108_v62 }
  0xf5   : > { %1121 = vtanh.f32 %v455_v63  ;;  %v977_v1 = vpop.f32.mrb[8].mxu0  ;;  %1020 = vmatmul.mubr.f32.vlgmr.msra.gmra.mrb[16].mxu0 %v1110_v0 }
  0xf6   : > { %v470_v2 = vadd.f32 %v977_v1, %v1332_v46  ;;  %v464_v3 = vpop.f32.mrb[9].mxu0 }
  0xf7   : > { %v1112_v4 = vpop.eup %1111  ;;  %v465_v5 = vadd.f32 %v1332_v46, %v464_v3 }
  0xf8   : > { %v1114_v6 = vpop.eup %1113  ;;  %1123 = vtanh.f32 %v470_v2  ;;  %1022 = vmatprep.mubr.f32.mxu0 %v1112_v4 }
  0xf9   : > { %1125 = vtanh.f32 %v465_v5  ;;  %v980_v7 = vpop.f32.mrb[10].mxu0  ;;  %1023 = vmatmul.mubr.f32.gmra.mrb[18].mxu0 %v1114_v6 }
  0xfa   : > { %v1116_v8 = vpop.eup %1115  ;;  %v480_v9 = vadd.f32 %v980_v7, %v1332_v46  ;;  %v474_v10 = vpop.f32.mrb[11].mxu0 }
  0xfb   : > { %v1118_v11 = vpop.eup %1117  ;;  %v475_v12 = vadd.f32 %v1332_v46, %v474_v10 }
  0xfc   : > { %1127 = vtanh.f32 %v480_v9  ;;  %1025 = vmatprep.mubr.f32.mxu0 %v1118_v11 }
  0xfd   : > { %1129 = vtanh.f32 %v475_v12  ;;  %v983_v13 = vpop.f32.mrb[12].mxu0  ;;  %1026 = vmatmul.mubr.f32.gmra.mrb[20].mxu0 %v1116_v8 }
  0xfe   : > { %v1120_v14 = vpop.eup %1119  ;;  %v490_v15 = vadd.f32 %v983_v13, %v1332_v46  ;;  %v484_v16 = vpop.f32.mrb[13].mxu0 }
  0xff   : > { %v1122_v17 = vpop.eup %1121  ;;  %v485_v18 = vadd.f32 %v1332_v46, %v484_v16 }
 0x100   : > { %1131 = vtanh.f32 %v490_v15  ;;  %1028 = vmatprep.mubr.f32.mxu1 %v1122_v17 }
 0x101   : > { %1133 = vtanh.f32 %v485_v18  ;;  %v986_v19 = vpop.f32.mrb[14].mxu0  ;;  %1029 = vmatmul.mubr.f32.vlgmr.msra.gmra.mrb[0].mxu1 %v1120_v14 }
 0x102   : > { %v1124_v20 = vpop.eup %1123  ;;  %v500_v21 = vadd.f32 %v986_v19, %v1332_v46  ;;  %v494_v22 = vpop.f32.mrb[15].mxu0 }
 0x103   : > { %v1126_v23 = vpop.eup %1125  ;;  %v495_v24 = vadd.f32 %v1332_v46, %v494_v22 }
 0x104   : > { %1135 = vtanh.f32 %v500_v21  ;;  %1031 = vmatprep.mubr.f32.mxu1 %v1126_v23 }
 0x105   : > { %1137 = vtanh.f32 %v495_v24  ;;  %1032 = vmatmul.mubr.f32.gmra.mrb[2].mxu1 %v1124_v20 }
 0x106   : > { %v1128_v25 = vpop.eup %1127 }
 0x107   : > { %v1130_v26 = vpop.eup %1129 }
 0x108   : > { %1034 = vmatprep.mubr.f32.mxu1 %v1130_v26 }
 0x109   : > { %1035 = vmatmul.mubr.f32.gmra.mrb[4].mxu1 %v1128_v25 }
 0x10a   : > { %v1132_v27 = vpop.eup %1131 }
 0x10b   : > { %v1134_v28 = vpop.eup %1133 }
 0x10c   : > { %1037 = vmatprep.mubr.f32.mxu1 %v1134_v28 }
 0x10d   : > { %1038 = vmatmul.mubr.f32.gmra.mrb[6].mxu1 %v1132_v27 }
 0x10e   : > { %v1136_v29 = vpop.eup %1135 }
 0x10f   : > { %v1138_v30 = vpop.eup %1137 }
 0x110   : > { %1040 = vmatprep.mubr.f32.mxu1 %v1138_v30 }
 0x111   : > { %1041 = vmatmul.mubr.f32.gmra.mrb[8].mxu1 %v1136_v29 }
 0x1c8   : > { %v1021_v32 = vpop.f32.mrb[16].mxu0 }
 0x1c9   : > { %v614_v33 = vadd.f32 %v1021_v32, %v1353_v31  ;;  %v608_v34 = vpop.f32.mrb[17].mxu0 }
 0x1ca   : > { %v609_v35 = vadd.f32 %v1353_v31, %v608_v34 }
 0x1cb   : > { %1139 = vtanh.f32 %v614_v33  ;;  %v758_v33 = vlaneseq }
 0x1cc   : > { %v1024_v36 = vpop.f32.mrb[18].mxu0  ;;  %1141 = vtanh.f32 %v609_v35  ;;  %v1446_v35 = vld [vmem:[%s1544_s6] ss:$0 sm:$0xff] }
 0x1cd   : > { %v624_v37 = vadd.f32 %v1024_v36, %v1353_v31  ;;  %v618_v38 = vpop.f32.mrb[19].mxu0  ;;  %v1440_v34 = vand.u32 127, %v758_v33 }
 0x1ce   : > { %v619_v39 = vadd.f32 %v1353_v31, %v618_v38 }
 0x1cf   : > { %1143 = vtanh.f32 %v624_v37  ;;  %vm760_vm1 = vcmp.ge.s32.totalorder %v1440_v34, 64 }
 0x1d0   : > { %v1027_v40 = vpop.f32.mrb[20].mxu0  ;;  %1145 = vtanh.f32 %v619_v39 }
 0x1d1   : > { %v634_v41 = vadd.f32 %v1027_v40, %v1353_v31  ;;  %v628_v42 = vpop.f32.mrb[21].mxu0 }
 0x1d2   : > { %v629_v43 = vadd.f32 %v1353_v31, %v628_v42 }
 0x1d4   : > { %1147 = vtanh.f32 %v629_v43  ;;  %v1030_v45 = vpop.f32.mrb[0].mxu1 }
 0x1d5   : > { %v1366_v46 = vpop.eup %1139  ;;  %1149 = vtanh.f32 %v634_v41  ;;  %v644_v47 = vadd.f32 %v1030_v45, %v1353_v31  ;;  %v638_v48 = vpop.f32.mrb[1].mxu1 }
 0x1d6   : > { %v639_v49 = vadd.f32 %v1353_v31, %v638_v48  ;;  %v711_v50 = vmul.f32 %v1366_v46, %v1364_v44  ;;  %v1372_v51 = vpop.eup %1141 }
 0x1d7   : > { %v710_v58 = vmul.f32 %v1372_v51, %v1364_v44 }
 0x1d8   : > { %1151 = vtanh.f32 %v639_v49  ;;  %v1033_v52 = vpop.f32.mrb[2].mxu1  ;;  %728 = vadd.xlane.f32.xlu0 %v711_v50 }
 0x1d9   : > { %v1374_v53 = vpop.eup %1143  ;;  %1153 = vtanh.f32 %v644_v47  ;;  %v654_v54 = vadd.f32 %v1033_v52, %v1353_v31  ;;  %v648_v55 = vpop.f32.mrb[3].mxu1 }
 0x1da   : > { %v649_v56 = vadd.f32 %v1353_v31, %v648_v55  ;;  %v713_v57 = vmul.f32 %v1374_v53, %v1364_v44  ;;  %v1382_v59 = vpop.eup %1145 }
 0x1db   : > { %v712_v1 = vmul.f32 %v1382_v59, %v1364_v44 }
 0x1dc   : > { %1155 = vtanh.f32 %v649_v56  ;;  %v1036_v60 = vpop.f32.mrb[4].mxu1  ;;  %732 = vadd.xlane.f32.xlu1 %v713_v57  ;;  %726 = vadd.xlane.f32.xlu0 %v710_v58 }
 0x1dd   : > { %1157 = vtanh.f32 %v654_v54  ;;  %v664_v61 = vadd.f32 %v1036_v60, %v1353_v31  ;;  %v658_v62 = vpop.f32.mrb[5].mxu1 }
 0x1de   : > { %v1385_v63 = vpop.eup %1147  ;;  %v659_v0 = vadd.f32 %v1353_v31, %v658_v62 }
 0x1df   : > { %v1390_v2 = vpop.eup %1149  ;;  %v714_v3 = vmul.f32 %v1385_v63, %v1364_v44 }
 0x1e0   : > { %1159 = vtanh.f32 %v659_v0  ;;  %v1039_v4 = vpop.f32.mrb[6].mxu1  ;;  %730 = vadd.xlane.f32.xlu1 %v712_v1  ;;  %v715_v9 = vmul.f32 %v1390_v2, %v1364_v44 }
 0x1e1   : > { %1161 = vtanh.f32 %v664_v61  ;;  %v674_v5 = vadd.f32 %v1039_v4, %v1353_v31  ;;  %v668_v6 = vpop.f32.mrb[7].mxu1  ;;  %734 = vadd.xlane.f32.xlu0 %v714_v3 }
 0x1e2   : > { %v1395_v7 = vpop.eup %1151  ;;  %v669_v8 = vadd.f32 %v1353_v31, %v668_v6 }
 0x1e3   : > { %v1400_v10 = vpop.eup %1153  ;;  %v716_v11 = vmul.f32 %v1395_v7, %v1364_v44 }
 0x1e4   : > { %1163 = vtanh.f32 %v669_v8  ;;  %v1042_v12 = vpop.f32.mrb[8].mxu1  ;;  %736 = vadd.xlane.f32.xlu1 %v715_v9  ;;  %v717_v17 = vmul.f32 %v1400_v10, %v1364_v44 }
 0x1e5   : > { %1165 = vtanh.f32 %v674_v5  ;;  %v684_v13 = vadd.f32 %v1042_v12, %v1353_v31  ;;  %v678_v14 = vpop.f32.mrb[9].mxu1  ;;  %738 = vadd.xlane.f32.xlu0 %v716_v11 }
 0x1e6   : > { %v1405_v15 = vpop.eup %1155  ;;  %v679_v16 = vadd.f32 %v1353_v31, %v678_v14 }
 0x1e7   : > { %v1410_v18 = vpop.eup %1157  ;;  %v718_v19 = vmul.f32 %v1405_v15, %v1364_v44 }
 0x1e8   : > { %1167 = vtanh.f32 %v679_v16  ;;  %740 = vadd.xlane.f32.xlu1 %v717_v17  ;;  %v719_v21 = vmul.f32 %v1410_v18, %v1364_v44 }
 0x1e9   : > { %1169 = vtanh.f32 %v684_v13  ;;  %742 = vadd.xlane.f32.xlu0 %v718_v19 }
 0x1ea   : > { %v1414_v20 = vpop.eup %1159 }
 0x1eb   : > { %v1418_v22 = vpop.eup %1161  ;;  %v720_v23 = vmul.f32 %v1414_v20, %v1364_v44 }
 0x1ec   : > { %744 = vadd.xlane.f32.xlu1 %v719_v21  ;;  %v721_v25 = vmul.f32 %v1418_v22, %v1364_v44 }
 0x1ed   : > { %746 = vadd.xlane.f32.xlu0 %v720_v23 }
 0x1ee   : > { %v1422_v24 = vpop.eup %1163 }
 0x1ef   : > { %v1426_v26 = vpop.eup %1165  ;;  %v722_v27 = vmul.f32 %v1422_v24, %v1364_v44 }
 0x1f0   : > { %748 = vadd.xlane.f32.xlu1 %v721_v25  ;;  %v723_v29 = vmul.f32 %v1426_v26, %v1364_v44 }
 0x1f1   : > { %750 = vadd.xlane.f32.xlu0 %v722_v27 }
 0x1f2   : > { %v1430_v28 = vpop.eup %1167 }
 0x1f3   : > { %v1434_v30 = vpop.eup %1169  ;;  %v724_v31 = vmul.f32 %v1430_v28, %v1364_v44 }
 0x1f4   : > { %752 = vadd.xlane.f32.xlu1 %v723_v29  ;;  %v725_v32 = vmul.f32 %v1434_v30, %v1364_v44 }
 0x1f5   : > { %754 = vadd.xlane.f32.xlu0 %v724_v31 }
 0x1f8   : > { %756 = vadd.xlane.f32.xlu1 %v725_v32 }
 0x265   : > { %v729_v36 = vpop.xlane.xlu0 %728 }
 0x266   : > { %v762_v37 = vsel %vm760_vm1, %v729_v36, %v1366_v46 }
 0x267   : > { %v785_v38 = vadd.f32 %v1446_v35, %v762_v37 }
 0x269   : > { %801 = vst [vmem:[%s1453_s17 + $0x8] sm:$0xff] %v785_v38  ;;  %v733_v39 = vpop.xlane.xlu1 %732  ;;  %v727_v40 = vpop.xlane.xlu0 %726 }
 0x26a   : > { %v764_v41 = vsel %vm760_vm1, %v733_v39, %v1374_v53  ;;  %v761_v42 = vsel %vm760_vm1, %v727_v40, %v1372_v51 }
 0x26b   : > { %v787_v43 = vadd.f32 %v1446_v35, %v764_v41  ;;  %v784_v44 = vadd.f32 %v1446_v35, %v761_v42 }
 0x26d   : > { %803 = vst [vmem:[%s1453_s17 + $0x18] sm:$0xff] %v787_v43  ;;  %800 = vst [vmem:[%s1453_s17] sm:$0xff] %v784_v44  ;;  %v731_v45 = vpop.xlane.xlu1 %730 }
 0x26e   : > { %v763_v46 = vsel %vm760_vm1, %v731_v45, %v1382_v59  ;;  %v735_v47 = vpop.xlane.xlu0 %734 }
 0x26f   : > { %v786_v48 = vadd.f32 %v1446_v35, %v763_v46  ;;  %v765_v49 = vsel %vm760_vm1, %v735_v47, %v1385_v63 }
 0x270   : > { %v788_v50 = vadd.f32 %v1446_v35, %v765_v49 }
 0x271   : > { %802 = vst [vmem:[%s1453_s17 + $0x10] sm:$0xff] %v786_v48  ;;  %v737_v51 = vpop.xlane.xlu1 %736 }
 0x272   : > { %804 = vst [vmem:[%s1453_s17 + $0x20] sm:$0xff] %v788_v50  ;;  %v766_v52 = vsel %vm760_vm1, %v737_v51, %v1390_v2  ;;  %v739_v53 = vpop.xlane.xlu0 %738 }
 0x273   : > { %v789_v54 = vadd.f32 %v1446_v35, %v766_v52  ;;  %v767_v55 = vsel %vm760_vm1, %v739_v53, %v1395_v7 }
 0x274   : > { %v790_v56 = vadd.f32 %v1446_v35, %v767_v55 }
 0x275   : > { %805 = vst [vmem:[%s1453_s17 + $0x28] sm:$0xff] %v789_v54  ;;  %v741_v57 = vpop.xlane.xlu1 %740 }
 0x276   : > { %806 = vst [vmem:[%s1453_s17 + $0x30] sm:$0xff] %v790_v56  ;;  %v768_v58 = vsel %vm760_vm1, %v741_v57, %v1400_v10  ;;  %v743_v59 = vpop.xlane.xlu0 %742 }
 0x277   : > { %v791_v60 = vadd.f32 %v1446_v35, %v768_v58  ;;  %v769_v61 = vsel %vm760_vm1, %v743_v59, %v1405_v15 }
 0x278   : > { %v792_v62 = vadd.f32 %v1446_v35, %v769_v61 }
 0x279   : > { %807 = vst [vmem:[%s1453_s17 + $0x38] sm:$0xff] %v791_v60  ;;  %v745_v63 = vpop.xlane.xlu1 %744 }
 0x27a   : > { %808 = vst [vmem:[%s1453_s17 + $0x40] sm:$0xff] %v792_v62  ;;  %v770_v0 = vsel %vm760_vm1, %v745_v63, %v1410_v18  ;;  %v747_v1 = vpop.xlane.xlu0 %746 }
 0x27b   : > { %v793_v2 = vadd.f32 %v1446_v35, %v770_v0  ;;  %v771_v3 = vsel %vm760_vm1, %v747_v1, %v1414_v20 }
 0x27c   : > { %v794_v4 = vadd.f32 %v1446_v35, %v771_v3 }
 0x27d   : > { %809 = vst [vmem:[%s1453_s17 + $0x48] sm:$0xff] %v793_v2  ;;  %v749_v5 = vpop.xlane.xlu1 %748 }
 0x27e   : > { %810 = vst [vmem:[%s1453_s17 + $0x50] sm:$0xff] %v794_v4  ;;  %v772_v6 = vsel %vm760_vm1, %v749_v5, %v1418_v22  ;;  %v751_v7 = vpop.xlane.xlu0 %750 }
 0x27f   : > { %v795_v8 = vadd.f32 %v1446_v35, %v772_v6  ;;  %v773_v9 = vsel %vm760_vm1, %v751_v7, %v1422_v24 }
 0x280   : > { %v796_v10 = vadd.f32 %v1446_v35, %v773_v9 }
 0x281   : > { %811 = vst [vmem:[%s1453_s17 + $0x58] sm:$0xff] %v795_v8  ;;  %v753_v11 = vpop.xlane.xlu1 %752 }
 0x282   : > { %812 = vst [vmem:[%s1453_s17 + $0x60] sm:$0xff] %v796_v10  ;;  %v774_v12 = vsel %vm760_vm1, %v753_v11, %v1426_v26  ;;  %v755_v13 = vpop.xlane.xlu0 %754 }
 0x283   : > { %v797_v14 = vadd.f32 %v1446_v35, %v774_v12  ;;  %v775_v15 = vsel %vm760_vm1, %v755_v13, %v1430_v28 }
 0x284   : > { %v798_v16 = vadd.f32 %v1446_v35, %v775_v15 }
 0x285   : > { %813 = vst [vmem:[%s1453_s17 + $0x68] sm:$0xff] %v797_v14  ;;  %v757_v17 = vpop.xlane.xlu1 %756 }
 0x286   : > { %814 = vst [vmem:[%s1453_s17 + $0x70] sm:$0xff] %v798_v16  ;;  %v776_v18 = vsel %vm760_vm1, %v757_v17, %v1434_v30 }
 0x287   : > { %v799_v19 = vadd.f32 %v1446_v35, %v776_v18 }
 0x289   : > { %815 = vst [vmem:[%s1453_s17 + $0x78] sm:$0xff] %v799_v19 }
 0x28a PF: > { %s17_s24 = sadd.s32 1, %s1177_s24  }
 0x28b   : > { %p14_p4 = scmp.ge.s32.totalorder %s17_s24, 4  }
 0x28d   :  { %16 = sbr.rel (!%p14_p4) target bundleno = 1 (0x1), region = 78 }

</bundles_post_ra>
